<compile_context>
chip_gen: v7x
topology: tpu7x:2x2x1
jax: 0.10.0
libtpu: 0.0.40
codegen_flags: <defaults>
</compile_context>

<pallas_src>
import functools
import math

import jax
import jax.numpy as jnp
from jax.experimental import pallas as pl
from jax.experimental.pallas import tpu as pltpu


def _round_up(x, m):
    return ((x + m - 1) // m) * m


# ---------------------------------------------------------------------------
# Stage 1: complex query formation, executed once per sample.
# ---------------------------------------------------------------------------
def _tnt_query_kernel(lhs_ref, rel_ref, rnt_ref, time_ref, q_ref):
    D = lhs_ref.shape[-1]
    R = D // 2

    lhs = lhs_ref[...]
    rel = rel_ref[...]
    rnt = rnt_ref[...]
    tim = time_ref[...]

    l0, l1 = lhs[:, :R], lhs[:, R:]
    r0, r1 = rel[:, :R], rel[:, R:]
    n0, n1 = rnt[:, :R], rnt[:, R:]
    t0, t1 = tim[:, :R], tim[:, R:]

    # full_rel = rel * time (complex) + rel_no_time
    fr0 = r0 * t0 - r1 * t1 + n0
    fr1 = r1 * t0 + r0 * t1 + n1

    # q = lhs * full_rel (complex)
    q_ref[:, :R] = l0 * fr0 - l1 * fr1
    q_ref[:, R:] = l1 * fr0 + l0 * fr1


def _form_query(lhs, rel, rnt, time):
    """Returns q with shape (Bp, 2R), Bp = B rounded up to the batch tile."""
    B, D = lhs.shape
    # 5 double-buffered (tbq, D) f32 blocks kept under ~16 MiB of VMEM.
    vmem_cap = max(8, ((16 * 1024 * 1024) // (10 * D * 4)) // 8 * 8)
    tbq = max(8, min(512, vmem_cap, _round_up(B, 8)))
    Bp = _round_up(B, tbq)

    def pad_rows(a):
        return a if a.shape[0] == Bp else jnp.pad(a, ((0, Bp - a.shape[0]), (0, 0)))

    spec = pl.BlockSpec((tbq, D), lambda i: (i, 0))
    q = pl.pallas_call(
        _tnt_query_kernel,
        out_shape=jax.ShapeDtypeStruct((Bp, D), jnp.float32),
        grid_spec=pltpu.PrefetchScalarGridSpec(
            num_scalar_prefetch=0,
            grid=(Bp // tbq,),
            in_specs=[spec, spec, spec, spec],
            out_specs=spec,
        ),
        compiler_params=pltpu.CompilerParams(
            dimension_semantics=("parallel",),
        ),
    )(pad_rows(lhs), pad_rows(rel), pad_rows(rnt), pad_rows(time))
    return q


# ---------------------------------------------------------------------------
# Stage 2: streamed entity matmul.  q (tb, 2R) @ ent_T (2R, te) -> (tb, te).
# ---------------------------------------------------------------------------
def _tnt_score_kernel(q_ref, right_t_ref, o_ref):
    o_ref[...] = jax.lax.dot_general(
        q_ref[...],
        right_t_ref[...],
        dimension_numbers=(((1,), (0,)), ((), ())),
        preferred_element_type=jnp.float32,
    )


def tnt_scores(lhs, rel, rnt, time, ent, *, tile_b=1024, tile_e=2048):
    """scores (B, E): complex-product query vs. every entity embedding row."""
    B, D = lhs.shape
    E = ent.shape[0]

    # --- stage 1: hoisted query formation (one pass over the batch) ---------
    q = _form_query(lhs, rel, rnt, time)          # (Bq, D), Bq multiple of 8
    Bq = q.shape[0]

    # --- stage 2: score matmul against the pre-transposed entity table ------
    # TODO(synk): store the entity table transposed at init time in production.
    right_t = ent.T                               # (D, E)

    tb = min(tile_b, Bq)                          # multiple of 8
    te = min(tile_e, _round_up(E, 128))           # multiple of 128

    # With a single batch tile, keep >= 2 entity tiles (v7x megacore sharding).
    ep_units = _round_up(E, 128) // 128
    if _round_up(Bq, tb) // tb == 1 and ep_units >= 2:
        te = min(te, (ep_units // 2) * 128)

    # Shrink te (then tb) until the double-buffered footprint fits the budget.
    def footprint(tb_, te_):
        return 2 * 4 * (tb_ * D + D * te_ + tb_ * te_)

    budget = 44 * 1024 * 1024
    while te > 128 and footprint(tb, te) > budget:
        te = max(128, ((te // 2) // 128) * 128)
    while tb > 8 and footprint(tb, te) > budget:
        tb = max(8, ((tb // 2) // 8) * 8)

    Bp = _round_up(Bq, tb)
    Ep = _round_up(E, te)
    q_p = q if Bq == Bp else jnp.pad(q, ((0, Bp - Bq), (0, 0)))
    right_tp = right_t if E == Ep else jnp.pad(right_t, ((0, 0), (0, Ep - E)))

    vmem_limit = int(min(56 * 1024 * 1024, footprint(tb, te) + (8 << 20)))

    out = pl.pallas_call(
        _tnt_score_kernel,
        out_shape=jax.ShapeDtypeStruct((Bp, Ep), jnp.float32),
        grid_spec=pltpu.PrefetchScalarGridSpec(
            num_scalar_prefetch=0,
            grid=(Bp // tb, Ep // te),
            in_specs=[
                pl.BlockSpec((tb, D), lambda i, j: (i, 0)),   # q, reused over j
                pl.BlockSpec((D, te), lambda i, j: (0, j)),   # entity slab stream
            ],
            out_specs=pl.BlockSpec((tb, te), lambda i, j: (i, j)),
        ),
        compiler_params=pltpu.CompilerParams(
            dimension_semantics=("parallel", "parallel"),
            vmem_limit_bytes=vmem_limit,
        ),
    )(q_p, right_tp)

    if Bp == B and Ep == E:
        return out
    return out[:B, :E]


# ---------------------------------------------------------------------------
# Forward pass (gathers + regularization factors are tiny plain-JAX glue).
# ---------------------------------------------------------------------------
@functools.partial(jax.jit, static_argnames=("no_time_emb",))
def tnt_forward(params, x, *, no_time_emb=False):
    """x: int32 (B, 4) columns = (head, relation, tail, timestamp)."""
    ent = params["ent_emb"]
    rel_w = params["rel_emb"]
    time_w = params["time_emb"]
    rnt_w = params["rel_no_time_emb"]

    lhs = jnp.take(ent, x[:, 0], axis=0)
    rel = jnp.take(rel_w, x[:, 1], axis=0)
    rnt = jnp.take(rnt_w, x[:, 1], axis=0)
    rhs = jnp.take(ent, x[:, 2], axis=0)
    time = jnp.take(time_w, x[:, 3], axis=0)

    scores = tnt_scores(lhs, rel, rnt, time, ent)

    # Regularization factors -- faithfully mirroring the PyTorch reference,
    # including its sqrt(rnt0^2 + rrt1^2) third term.
    R = ent.shape[1] // 2
    l0, l1 = lhs[:, :R], lhs[:, R:]
    r0, r1 = rel[:, :R], rel[:, R:]
    n0, _n1 = rnt[:, :R], rnt[:, R:]
    h0, h1 = rhs[:, :R], rhs[:, R:]
    t0, t1 = time[:, :R], time[:, R:]
    rrt0 = r0 * t0 - r1 * t1
    rrt1 = r1 * t0 + r0 * t1
    cbrt2 = math.pow(2.0, 1.0 / 3.0)
    factors = {
        "n3": (
            cbrt2 * jnp.sqrt(l0 ** 2 + l1 ** 2),
            jnp.sqrt(rrt0 ** 2 + rrt1 ** 2),
            jnp.sqrt(n0 ** 2 + rrt1 ** 2),
            cbrt2 * jnp.sqrt(h0 ** 2 + h1 ** 2),
        ),
        "lambda3": time_w[:-1] if no_time_emb else time_w,
    }
    return scores, factors


def _reference_scores(params, x):
    ent = params["ent_emb"]
    lhs = ent[x[:, 0]]
    rel = params["rel_emb"][x[:, 1]]
    rnt = params["rel_no_time_emb"][x[:, 1]]
    time = params["time_emb"][x[:, 3]]
    R = ent.shape[1] // 2
    l0, l1 = lhs[:, :R], lhs[:, R:]
    r0, r1 = rel[:, :R], rel[:, R:]
    n0, n1 = rnt[:, :R], rnt[:, R:]
    t0, t1 = time[:, :R], time[:, R:]
    e0, e1 = ent[:, :R], ent[:, R:]
    fr0 = r0 * t0 - r1 * t1 + n0
    fr1 = r1 * t0 + r0 * t1 + n1
    q0 = l0 * fr0 - l1 * fr1
    q1 = l1 * fr0 + l0 * fr1
    hi = jax.lax.Precision.HIGHEST
    return jnp.dot(q0, e0.T, precision=hi) + jnp.dot(q1, e1.T, precision=hi)


if __name__ == "__main__":
    key = jax.random.PRNGKey(0)
    rank = 128                      # embedding dim = 2 * rank = 256
    num_ent, num_rel, num_ts = 256, 12, 32
    batch = 16
    init_size = 0.1

    k1, k2, k3, k4, k5 = jax.random.split(key, 5)
    params = {
        "ent_emb": jax.random.normal(k1, (num_ent, 2 * rank), jnp.float32) * init_size,
        "rel_emb": jax.random.normal(k2, (num_rel, 2 * rank), jnp.float32) * init_size,
        "time_emb": jax.random.normal(k3, (num_ts, 2 * rank), jnp.float32) * init_size,
        "rel_no_time_emb": jax.random.normal(k4, (num_rel, 2 * rank), jnp.float32) * init_size,
    }

    ks = jax.random.split(k5, 4)
    x = jnp.stack(
        [
            jax.random.randint(ks[0], (batch,), 0, num_ent),
            jax.random.randint(ks[1], (batch,), 0, num_rel),
            jax.random.randint(ks[2], (batch,), 0, num_ent),
            jax.random.randint(ks[3], (batch,), 0, num_ts),
        ],
        axis=1,
    ).astype(jnp.int32)

    scores, factors = tnt_forward(params, x)
    scores = jax.block_until_ready(scores)

    ref = _reference_scores(params, x)
    assert scores.shape == (batch, num_ent)
    max_err = float(jnp.max(jnp.abs(scores - ref)))
    assert jnp.allclose(scores, ref, rtol=1e-3, atol=1e-4), max_err
    assert factors["n3"][0].shape == (batch, rank)
    assert factors["lambda3"].shape == (num_ts, 2 * rank)
    print("KERNEL_OK")
</pallas_src>

<mosaic_0001>
module attributes {stable_mosaic.version = 11 : i64} {
  func.func @_tnt_query_kernel(%arg0: i32, %arg1: memref<16x256xf32, #tpu.memory_space<vmem>>, %arg2: memref<16x256xf32, #tpu.memory_space<vmem>>, %arg3: memref<16x256xf32, #tpu.memory_space<vmem>>, %arg4: memref<16x256xf32, #tpu.memory_space<vmem>>, %arg5: memref<16x256xf32, #tpu.memory_space<vmem>>) attributes {dimension_semantics = [#tpu.dimension_semantics<parallel>], iteration_bounds = array<i64: 1>, scalar_prefetch = 0 : i64, scratch_operands = 0 : i64, tpu.core_type = #tpu.core_type<tc>, window_params = [{transform_indices = @transform_0, window_bounds = array<i64: 16, 256>}, {transform_indices = @transform_1, window_bounds = array<i64: 16, 256>}, {transform_indices = @transform_2, window_bounds = array<i64: 16, 256>}, {transform_indices = @transform_3, window_bounds = array<i64: 16, 256>}, {transform_indices = @transform_4, window_bounds = array<i64: 16, 256>}]} {
    %c0 = arith.constant 0 : index
    %c0_0 = arith.constant 0 : index
    %0 = vector.load %arg1[%c0, %c0_0] : memref<16x256xf32, #tpu.memory_space<vmem>>, vector<16x256xf32>
    %c0_1 = arith.constant 0 : index
    %c0_2 = arith.constant 0 : index
    %1 = vector.load %arg2[%c0_1, %c0_2] : memref<16x256xf32, #tpu.memory_space<vmem>>, vector<16x256xf32>
    %c0_3 = arith.constant 0 : index
    %c0_4 = arith.constant 0 : index
    %2 = vector.load %arg3[%c0_3, %c0_4] : memref<16x256xf32, #tpu.memory_space<vmem>>, vector<16x256xf32>
    %c0_5 = arith.constant 0 : index
    %c0_6 = arith.constant 0 : index
    %3 = vector.load %arg4[%c0_5, %c0_6] : memref<16x256xf32, #tpu.memory_space<vmem>>, vector<16x256xf32>
    %4 = vector.extract_strided_slice %0 {offsets = [0, 0], sizes = [16, 128], strides = [1, 1]} : vector<16x256xf32> to vector<16x128xf32>
    %5 = vector.extract_strided_slice %0 {offsets = [0, 128], sizes = [16, 128], strides = [1, 1]} : vector<16x256xf32> to vector<16x128xf32>
    %6 = vector.extract_strided_slice %1 {offsets = [0, 0], sizes = [16, 128], strides = [1, 1]} : vector<16x256xf32> to vector<16x128xf32>
    %7 = vector.extract_strided_slice %1 {offsets = [0, 128], sizes = [16, 128], strides = [1, 1]} : vector<16x256xf32> to vector<16x128xf32>
    %8 = vector.extract_strided_slice %2 {offsets = [0, 0], sizes = [16, 128], strides = [1, 1]} : vector<16x256xf32> to vector<16x128xf32>
    %9 = vector.extract_strided_slice %2 {offsets = [0, 128], sizes = [16, 128], strides = [1, 1]} : vector<16x256xf32> to vector<16x128xf32>
    %10 = vector.extract_strided_slice %3 {offsets = [0, 0], sizes = [16, 128], strides = [1, 1]} : vector<16x256xf32> to vector<16x128xf32>
    %11 = vector.extract_strided_slice %3 {offsets = [0, 128], sizes = [16, 128], strides = [1, 1]} : vector<16x256xf32> to vector<16x128xf32>
    %12 = arith.mulf %6, %10 : vector<16x128xf32>
    %13 = arith.mulf %7, %11 : vector<16x128xf32>
    %14 = arith.subf %12, %13 : vector<16x128xf32>
    %15 = arith.addf %14, %8 : vector<16x128xf32>
    %16 = arith.mulf %7, %10 : vector<16x128xf32>
    %17 = arith.mulf %6, %11 : vector<16x128xf32>
    %18 = arith.addf %16, %17 : vector<16x128xf32>
    %19 = arith.addf %18, %9 : vector<16x128xf32>
    %20 = arith.mulf %4, %15 : vector<16x128xf32>
    %21 = arith.mulf %5, %19 : vector<16x128xf32>
    %22 = arith.subf %20, %21 : vector<16x128xf32>
    %c0_7 = arith.constant 0 : index
    %c0_8 = arith.constant 0 : index
    %23 = vector.load %arg5[%c0_7, %c0_8] : memref<16x256xf32, #tpu.memory_space<vmem>>, vector<16x128xf32>
    tpu.vector_store %arg5[%c0_7, %c0_8], %22 {strides = array<i32>} : memref<16x256xf32, #tpu.memory_space<vmem>>, vector<16x128xf32>,
    %24 = arith.mulf %5, %15 : vector<16x128xf32>
    %25 = arith.mulf %4, %19 : vector<16x128xf32>
    %26 = arith.addf %24, %25 : vector<16x128xf32>
    %c0_9 = arith.constant 0 : index
    %c128 = arith.constant 128 : index
    %27 = vector.load %arg5[%c0_9, %c128] : memref<16x256xf32, #tpu.memory_space<vmem>>, vector<16x128xf32>
    tpu.vector_store %arg5[%c0_9, %c128], %26 {strides = array<i32>} : memref<16x256xf32, #tpu.memory_space<vmem>>, vector<16x128xf32>,
    return
  }
  func.func @transform_0(%arg0: i32) -> (i32, i32) {
    %c0_i32 = arith.constant 0 : i32
    %c0_i32_0 = arith.constant 0 : i32
    return %arg0, %c0_i32 : i32, i32
  }
  func.func @transform_1(%arg0: i32) -> (i32, i32) {
    %c0_i32 = arith.constant 0 : i32
    %c0_i32_0 = arith.constant 0 : i32
    return %arg0, %c0_i32 : i32, i32
  }
  func.func @transform_2(%arg0: i32) -> (i32, i32) {
    %c0_i32 = arith.constant 0 : i32
    %c0_i32_0 = arith.constant 0 : i32
    return %arg0, %c0_i32 : i32, i32
  }
  func.func @transform_3(%arg0: i32) -> (i32, i32) {
    %c0_i32 = arith.constant 0 : i32
    %c0_i32_0 = arith.constant 0 : i32
    return %arg0, %c0_i32 : i32, i32
  }
  func.func @transform_4(%arg0: i32) -> (i32, i32) {
    %c0_i32 = arith.constant 0 : i32
    %c0_i32_0 = arith.constant 0 : i32
    return %arg0, %c0_i32 : i32, i32
  }
}

module attributes {stable_mosaic.version = 11 : i64} {
  func.func @_tnt_score_kernel(%arg0: i32, %arg1: i32, %arg2: memref<16x256xf32, #tpu.memory_space<vmem>>, %arg3: memref<256x128xf32, #tpu.memory_space<vmem>>, %arg4: memref<16x128xf32, #tpu.memory_space<vmem>>) attributes {dimension_semantics = [#tpu.dimension_semantics<parallel>, #tpu.dimension_semantics<parallel>], iteration_bounds = array<i64: 1, 2>, scalar_prefetch = 0 : i64, scratch_operands = 0 : i64, tpu.core_type = #tpu.core_type<tc>, window_params = [{transform_indices = @transform_0, window_bounds = array<i64: 16, 256>}, {transform_indices = @transform_1, window_bounds = array<i64: 256, 128>}, {transform_indices = @transform_2, window_bounds = array<i64: 16, 128>}]} {
    %c0 = arith.constant 0 : index
    %c0_0 = arith.constant 0 : index
    %0 = vector.load %arg2[%c0, %c0_0] : memref<16x256xf32, #tpu.memory_space<vmem>>, vector<16x256xf32>
    %c0_1 = arith.constant 0 : index
    %c0_2 = arith.constant 0 : index
    %1 = vector.load %arg3[%c0_1, %c0_2] : memref<256x128xf32, #tpu.memory_space<vmem>>, vector<256x128xf32>
    %cst = arith.constant dense<0.000000e+00> : vector<16x128xf32>
    %2 = tpu.matmul %0, %1, %cst {dimension_numbers = #tpu.dot_dimension_numbers<[1], [0], [0], [1], [0, 0, 1, 1], [], []>} : vector<16x256xf32>, vector<256x128xf32>, vector<16x128xf32> -> vector<16x128xf32>
    %c0_3 = arith.constant 0 : index
    %c0_4 = arith.constant 0 : index
    %3 = vector.load %arg4[%c0_3, %c0_4] : memref<16x128xf32, #tpu.memory_space<vmem>>, vector<16x128xf32>
    tpu.vector_store %arg4[%c0_3, %c0_4], %2 {strides = array<i32>} : memref<16x128xf32, #tpu.memory_space<vmem>>, vector<16x128xf32>,
    return
  }
  func.func @transform_0(%arg0: i32, %arg1: i32) -> (i32, i32) {
    %c0_i32 = arith.constant 0 : i32
    %c0_i32_0 = arith.constant 0 : i32
    return %arg0, %c0_i32 : i32, i32
  }
  func.func @transform_1(%arg0: i32, %arg1: i32) -> (i32, i32) {
    %c0_i32 = arith.constant 0 : i32
    %c0_i32_0 = arith.constant 0 : i32
    return %c0_i32, %arg1 : i32, i32
  }
  func.func @transform_2(%arg0: i32, %arg1: i32) -> (i32, i32) {
    %c0_i32 = arith.constant 0 : i32
    return %arg0, %arg1 : i32, i32
  }
}

</mosaic_0001>

<bundles_post_ra>
// kernel: tnt_forward.2
= control target key start
LH: loop header
LB: loop body
LE: loop exit
PB: predicated region body
PF: predicated region fallthrough
CT: control target
= control target key end

     0   :  { %s154_s1 = inlined_call_operand.vmem [shape: f32[16,256], index: 1, kind: input, shape index: {}]   ;;  %s155_s3 = inlined_call_operand.vmem [shape: f32[16,256], index: 3, kind: input, shape index: {}]   ;;  %s156_s2 = inlined_call_operand.vmem [shape: f32[16,256], index: 2, kind: input, shape index: {}]   ;;  %s157_s0 = inlined_call_operand.vmem [shape: f32[16,256], index: 0, kind: input, shape index: {}]   ;;  %s158_s4 = inlined_call_operand.vmem [shape: f32[16,256], index: 4, kind: output, shape index: {}]  }
   0x1   :  { %v21_v0 = vld [vmem:[%s154_s1] sm:$0xff]  ;;  %v22_v1 = vld [vmem:[%s154_s1 + $0x8] sm:$0xff]  ;;  %v23_v8 = vld [vmem:[%s154_s1 + $0x10] sm:$0xff] }
   0x2   :  { %v29_v2 = vld [vmem:[%s155_s3] sm:$0xff]  ;;  %v30_v3 = vld [vmem:[%s155_s3 + $0x8] sm:$0xff]  ;;  %v24_v9 = vld [vmem:[%s154_s1 + $0x18] sm:$0xff] }
   0x3   :  { %v33_v4 = vmul.f32 %v29_v2, %v21_v0  ;;  %v35_v5 = vmul.f32 %v30_v3, %v22_v1  ;;  %v41_v6 = vmul.f32 %v29_v2, %v22_v1  ;;  %v43_v7 = vmul.f32 %v30_v3, %v21_v0  ;;  %v25_v10 = vld [vmem:[%s156_s2] sm:$0xff]  ;;  %v26_v11 = vld [vmem:[%s156_s2 + $0x8] sm:$0xff]  ;;  %v31_v12 = vld [vmem:[%s155_s3 + $0x10] sm:$0xff] }
   0x4   :  { %v32_v15 = vld [vmem:[%s155_s3 + $0x18] sm:$0xff]  ;;  %v34_v16 = vmul.f32 %v31_v12, %v23_v8  ;;  %v42_v17 = vmul.f32 %v31_v12, %v24_v9  ;;  %v17_v18 = vld [vmem:[%s157_s0] sm:$0xff]  ;;  %v18_v19 = vld [vmem:[%s157_s0 + $0x8] sm:$0xff] }
   0x5   :  { %v37_v13 = vsub.f32 %v33_v4, %v35_v5  ;;  %v45_v14 = vadd.f32 %v43_v7, %v41_v6  ;;  %v36_v20 = vmul.f32 %v32_v15, %v24_v9  ;;  %v44_v21 = vmul.f32 %v32_v15, %v23_v8  ;;  %v27_v24 = vld [vmem:[%s156_s2 + $0x10] sm:$0xff]  ;;  %v28_v25 = vld [vmem:[%s156_s2 + $0x18] sm:$0xff] }
   0x6   :  { %v19_v30 = vld [vmem:[%s157_s0 + $0x10] sm:$0xff]  ;;  %v20_v31 = vld [vmem:[%s157_s0 + $0x18] sm:$0xff] }
   0x7   :  { %v39_v22 = vadd.f32 %v37_v13, %v25_v10  ;;  %v47_v23 = vadd.f32 %v45_v14, %v26_v11  ;;  %v38_v26 = vsub.f32 %v34_v16, %v36_v20  ;;  %v46_v27 = vadd.f32 %v44_v21, %v42_v17 }
   0x9   :  { %v49_v28 = vmul.f32 %v39_v22, %v17_v18  ;;  %v51_v29 = vmul.f32 %v47_v23, %v18_v19  ;;  %v57_v32 = vmul.f32 %v39_v22, %v18_v19  ;;  %v59_v33 = vmul.f32 %v47_v23, %v17_v18 }
   0xa   :  { %v40_v34 = vadd.f32 %v38_v26, %v27_v24  ;;  %v48_v35 = vadd.f32 %v46_v27, %v28_v25 }
   0xb   :  { %v53_v36 = vsub.f32 %v49_v28, %v51_v29  ;;  %v61_v37 = vadd.f32 %v59_v33, %v57_v32 }
   0xc   :  { %v50_v38 = vmul.f32 %v40_v34, %v19_v30  ;;  %v52_v39 = vmul.f32 %v48_v35, %v20_v31  ;;  %v58_v40 = vmul.f32 %v40_v34, %v20_v31  ;;  %v60_v41 = vmul.f32 %v48_v35, %v19_v30 }
   0xd   :  { %55 = vst [vmem:[%s158_s4] sm:$0xff] %v53_v36  ;;  %63 = vst [vmem:[%s158_s4 + $0x8] sm:$0xff] %v61_v37 }
   0xe   :  { %v54_v42 = vsub.f32 %v50_v38, %v52_v39  ;;  %v62_v43 = vadd.f32 %v60_v41, %v58_v40 }
  0x10   :  { %56 = vst [vmem:[%s158_s4 + $0x10] sm:$0xff] %v54_v42  ;;  %64 = vst [vmem:[%s158_s4 + $0x18] sm:$0xff] %v62_v43 }

// kernel: tnt_forward.3
= control target key start
LH: loop header
LB: loop body
LE: loop exit
PB: predicated region body
PF: predicated region fallthrough
CT: control target
= control target key end

     0   :  { %7 = vsyncpa [#allocation4], 0  ;;  %s1057_s0 = inlined_call_operand.vmem [shape: f32[16,256], index: 0, kind: input, shape index: {}]   ;;  %s1058_s1 = inlined_call_operand.vmem [shape: f32[256,256], index: 1, kind: input, shape index: {}]   ;;  %s1059_s2 = inlined_call_operand.hbm [shape: f32[16,256], index: 2, kind: output, shape index: {}]  }
   0x1   :  { %9 = vsyncpa [#allocation4 + $0x1], 0  ;;  %s819_s9 = smov 0   ;;  %s821_s10 = smov 0  }
   0x2   :  { %s823_s11 = smov 0   ;;  %s825_s12 = smov 0  }
   0x3   :  { %s827_s13 = smov 0   ;;  %s829_s14 = smov 0  }
   0x4 LB: > { %s562_s15 = sadd.s32 4294967295, %s798_s14   ;;  %s563_s16 = sadd.s32 4294967294, %s798_s14   ;;  %s798_s14 = sphi %s829_s14, %s15_s14   ;;  %s794_s13 = sphi %s827_s13, %s1066_s13   ;;  %s790_s12 = sphi %s825_s12, %s1065_s12   ;;  %s786_s11 = sphi %s823_s11, %s1064_s11   ;;  %s782_s10 = sphi %s821_s10, %s1063_s10   ;;  %s778_s9 = sphi %s819_s9, %s1062_s9  }
   0x5   : > { %s24_s17 = sadd.s32 1, %s794_s13  ;;  %s60_s18 = sadd.s32 1, %s786_s11 }
   0x6   : > { %p25_p0 = scmp.ge.s32.totalorder %s24_s17, 2  ;;  %p67_p1 = scmp.ne.s32.totalorder %s786_s11, %s782_s10 }
   0x7   : > { %p68_p2 = scmp.eq.s32.totalorder %s798_s14, 0  ;;  %p99_p3 = scmp.eq.s32.totalorder %s562_s15, 1 }
   0x8   : > { %s1068_s17 = smov (%p25_p0, %s24_s17), 0  ;;  %p104_p6 = scmp.ne.s32.totalorder %s782_s10, %s778_s9 }
   0x9   : > { %p69_p4 = por %p68_p2, %p67_p1  ;;  %p858_p5 = por %p99_p3, %p67_p1 }
   0xa   : > { %s57_s20 = ssub.s32 %s794_s13, %s1068_s17  ;;  %p105_p8 = scmp.eq.s32.totalorder %s563_s16, 1 }
   0xb   : > { %p58_p7 = scmp.eq.s32.totalorder %s57_s20, 0  ;;  %p566_p10 = scmp.ge.s32.totalorder %s798_s14, 2 }
   0xc   : > { %p869_p9 = por %p105_p8, %p104_p6 }
   0xd   : > { %s867_s21 = scalar_select %p58_p7, %s786_s11, %s60_s18  }
   0xe   : > { %131 = sbr.rel (%p566_p10) target bundleno = 41 (0x29), region = 20 }
  0x15   : > { %134 = sbr.rel (!%p69_p4) target bundleno = 41 (0x29), region = 24  ;;  %s136_s23 = sand.u32 (%p69_p4), 1, %s786_s11  }
  0x16   : > { %s568_s24 = sshll.u32 (%p69_p4), %s794_s13, 3  ;;  %s567_s25 = sshll.u32 (%p69_p4), %s136_s23, 8 }
  0x17   : > { %s881_s28 = scalar_lea.vmem (%p69_p4), %s1058_s1, %s568_s24  ;;  %s886_s29 = scalar_lea.vmem (%p69_p4), [#allocation2], %s567_s25 }
  0x18   : > { %v230_v0 = vld [vmem:[%s881_s28] sm:$0xff] (%p69_p4)  ;;  %v232_v1 = vld [vmem:[%s881_s28 + $0x10] sm:$0xff] (%p69_p4) }
  0x19   : > { %v234_v2 = vld [vmem:[%s881_s28 + $0x20] sm:$0xff] (%p69_p4)  ;;  %231 = vst [vmem:[%s886_s29] sm:$0xff] (%p69_p4), %v230_v0  ;;  %233 = vst [vmem:[%s886_s29 + $0x8] sm:$0xff] (%p69_p4), %v232_v1  ;;  %v236_v3 = vld [vmem:[%s881_s28 + $0x30] sm:$0xff] (%p69_p4) }
  0x1a   : > { %235 = vst [vmem:[%s886_s29 + $0x10] sm:$0xff] (%p69_p4), %v234_v2  ;;  %v238_v4 = vld [vmem:[%s881_s28 + $0x40] sm:$0xff] (%p69_p4)  ;;  %v240_v5 = vld [vmem:[%s881_s28 + $0x50] sm:$0xff] (%p69_p4)  ;;  %237 = vst [vmem:[%s886_s29 + $0x18] sm:$0xff] (%p69_p4), %v236_v3 }
  0x1b   : > { %239 = vst [vmem:[%s886_s29 + $0x20] sm:$0xff] (%p69_p4), %v238_v4  ;;  %241 = vst [vmem:[%s886_s29 + $0x28] sm:$0xff] (%p69_p4), %v240_v5  ;;  %v242_v6 = vld [vmem:[%s881_s28 + $0x60] sm:$0xff] (%p69_p4)  ;;  %v244_v7 = vld [vmem:[%s881_s28 + $0x70] sm:$0xff] (%p69_p4) }
  0x1c   : > { %v246_v8 = vld [vmem:[%s881_s28 + $0x80] sm:$0xff]  ;;  %243 = vst [vmem:[%s886_s29 + $0x30] sm:$0xff] %v242_v6  ;;  %245 = vst [vmem:[%s886_s29 + $0x38] sm:$0xff] %v244_v7  ;;  %v248_v9 = vld [vmem:[%s881_s28 + $0x90] sm:$0xff] }
  0x1d   : > { %247 = vst [vmem:[%s886_s29 + $0x40] sm:$0xff] %v246_v8  ;;  %v250_v10 = vld [vmem:[%s881_s28 + $0xa0] sm:$0xff]  ;;  %v252_v11 = vld [vmem:[%s881_s28 + $0xb0] sm:$0xff]  ;;  %249 = vst [vmem:[%s886_s29 + $0x48] sm:$0xff] %v248_v9 }
  0x1e   : > { %251 = vst [vmem:[%s886_s29 + $0x50] sm:$0xff] %v250_v10  ;;  %253 = vst [vmem:[%s886_s29 + $0x58] sm:$0xff] %v252_v11  ;;  %v254_v12 = vld [vmem:[%s881_s28 + $0xc0] sm:$0xff]  ;;  %v256_v13 = vld [vmem:[%s881_s28 + $0xd0] sm:$0xff] }
  0x1f   : > { %v258_v14 = vld [vmem:[%s881_s28 + $0xe0] sm:$0xff]  ;;  %255 = vst [vmem:[%s886_s29 + $0x60] sm:$0xff] %v254_v12  ;;  %257 = vst [vmem:[%s886_s29 + $0x68] sm:$0xff] %v256_v13  ;;  %v260_v15 = vld [vmem:[%s881_s28 + $0xf0] sm:$0xff] }
  0x20   : > { %259 = vst [vmem:[%s886_s29 + $0x70] sm:$0xff] %v258_v14  ;;  %v262_v16 = vld [vmem:[%s881_s28 + $0x100] sm:$0xff]  ;;  %v264_v17 = vld [vmem:[%s881_s28 + $0x110] sm:$0xff]  ;;  %261 = vst [vmem:[%s886_s29 + $0x78] sm:$0xff] %v260_v15 }
  0x21   : > { %263 = vst [vmem:[%s886_s29 + $0x80] sm:$0xff] %v262_v16  ;;  %265 = vst [vmem:[%s886_s29 + $0x88] sm:$0xff] %v264_v17  ;;  %v266_v18 = vld [vmem:[%s881_s28 + $0x120] sm:$0xff]  ;;  %v268_v19 = vld [vmem:[%s881_s28 + $0x130] sm:$0xff] }
  0x22   : > { %v270_v20 = vld [vmem:[%s881_s28 + $0x140] sm:$0xff]  ;;  %267 = vst [vmem:[%s886_s29 + $0x90] sm:$0xff] %v266_v18  ;;  %269 = vst [vmem:[%s886_s29 + $0x98] sm:$0xff] %v268_v19  ;;  %v272_v21 = vld [vmem:[%s881_s28 + $0x150] sm:$0xff] }
  0x23   : > { %271 = vst [vmem:[%s886_s29 + $0xa0] sm:$0xff] %v270_v20  ;;  %v274_v22 = vld [vmem:[%s881_s28 + $0x160] sm:$0xff]  ;;  %v276_v23 = vld [vmem:[%s881_s28 + $0x170] sm:$0xff]  ;;  %273 = vst [vmem:[%s886_s29 + $0xa8] sm:$0xff] %v272_v21 }
  0x24   : > { %275 = vst [vmem:[%s886_s29 + $0xb0] sm:$0xff] %v274_v22  ;;  %277 = vst [vmem:[%s886_s29 + $0xb8] sm:$0xff] %v276_v23  ;;  %v278_v24 = vld [vmem:[%s881_s28 + $0x180] sm:$0xff]  ;;  %v280_v25 = vld [vmem:[%s881_s28 + $0x190] sm:$0xff] }
  0x25   : > { %v282_v26 = vld [vmem:[%s881_s28 + $0x1a0] sm:$0xff]  ;;  %279 = vst [vmem:[%s886_s29 + $0xc0] sm:$0xff] %v278_v24  ;;  %281 = vst [vmem:[%s886_s29 + $0xc8] sm:$0xff] %v280_v25  ;;  %v284_v27 = vld [vmem:[%s881_s28 + $0x1b0] sm:$0xff] }
  0x26   : > { %283 = vst [vmem:[%s886_s29 + $0xd0] sm:$0xff] %v282_v26  ;;  %v286_v28 = vld [vmem:[%s881_s28 + $0x1c0] sm:$0xff]  ;;  %v288_v29 = vld [vmem:[%s881_s28 + $0x1d0] sm:$0xff]  ;;  %285 = vst [vmem:[%s886_s29 + $0xd8] sm:$0xff] %v284_v27 }
  0x27   : > { %287 = vst [vmem:[%s886_s29 + $0xe0] sm:$0xff] %v286_v28  ;;  %289 = vst [vmem:[%s886_s29 + $0xe8] sm:$0xff] %v288_v29  ;;  %v290_v30 = vld [vmem:[%s881_s28 + $0x1e0] sm:$0xff]  ;;  %v292_v31 = vld [vmem:[%s881_s28 + $0x1f0] sm:$0xff] }
  0x28   : > { %291 = vst [vmem:[%s886_s29 + $0xf0] sm:$0xff] %v290_v30  ;;  %293 = vst [vmem:[%s886_s29 + $0xf8] sm:$0xff] %v292_v31 }
  0x29 PF: > { %p569_p11 = scmp.ge.s32.totalorder %s798_s14, 1  ;;  %p298_p12 = scmp.lt.s32.totalorder %s798_s14, 3 }
  0x2b   : > { %p299_p13 = pnand %p569_p11, %p298_p12 }
  0x2c   : > { %s952_s30 = sand.u32 (!%p299_p13), 1, %s782_s10   ;;  %v341_v32 = vld [vmem:[%s1057_s0 + $0x8] sm:$0xff] (!%p299_p13)  ;;  %v343_v33 = vld [vmem:[%s1057_s0 + $0x18] sm:$0xff] (!%p299_p13)  ;;  %v340_v18 = vld [vmem:[%s1057_s0] sm:$0xff] (!%p299_p13)  ;;  %s573_s26 = sshll.u32 (!%p299_p13), %s790_s12, 7 }
  0x2d   : > { %302 = sbr.rel (%p299_p13) target bundleno = 313 (0x139), region = 62  ;;  %s570_s7 = sshll.u32 (!%p299_p13), %s952_s30, 8  ;;  %440 = vmatprep.mubr.f32.mxu0 (!%p299_p13), %v341_v32  ;;  %445 = vmatprep.mubr.f32.mxu1 (!%p299_p13), %v343_v33  ;;  %v342_v19 = vld [vmem:[%s1057_s0 + $0x10] sm:$0xff] (!%p299_p13) }
  0x2e   : > { %s961_s8 = scalar_lea.vmem (!%p299_p13), [#allocation2], %s570_s7  ;;  %s571_s23 = sshll.u32 (!%p299_p13), %s952_s30, 4 }
  0x2f   : > { %v360_v34 = vld [vmem:[%s961_s8 + $0x80] sm:$0xff] (!%p299_p13)  ;;  %v361_v35 = vld [vmem:[%s961_s8 + $0x88] sm:$0xff] (!%p299_p13)  ;;  %v362_v39 = vld [vmem:[%s961_s8 + $0x90] sm:$0xff] (!%p299_p13)  ;;  %s331_s24 = scalar_lea.vmem (!%p299_p13), [#allocation3], %s571_s23  ;;  %s1008_s29 = scalar_lea.hbm (!%p299_p13), %s1059_s2, %s573_s26 }
  0x30   : > { %v344_v36 = vld [vmem:[%s961_s8] sm:$0xff] (!%p299_p13)  ;;  %v614_v37 = vpack.c.bf16 (!%p299_p13), %v361_v35, %v360_v34  ;;  %v345_v38 = vld [vmem:[%s961_s8 + $0x8] sm:$0xff] (!%p299_p13)  ;;  %v363_v40 = vld [vmem:[%s961_s8 + $0x98] sm:$0xff] (!%p299_p13)  ;;  %s469_s25 = sshll.u32 (!%p299_p13), %s331_s24, 4  ;;  %s454_s3 = scalar_lea.sflag (!%p299_p13), [#allocation4], %s952_s30  ;;  %s1003_s25 = int_to_ptr.vmem [resolvable:$true] %s469_s25 }
  0x31   : > { %v616_v41 = vpack.c.bf16 (!%p299_p13), %v345_v38, %v344_v36  ;;  %v618_v42 = vpack.c.bf16 (!%p299_p13), %v363_v40, %v362_v39  ;;  %v346_v43 = vld [vmem:[%s961_s8 + $0x10] sm:$0xff] (!%p299_p13)  ;;  %v347_v44 = vld [vmem:[%s961_s8 + $0x18] sm:$0xff] (!%p299_p13)  ;;  %v364_v45 = vld [vmem:[%s961_s8 + $0xa0] sm:$0xff] (!%p299_p13)  ;;  %s720_s12 = scalar_lea.vmem (!%p299_p13), %s1003_s25, 256  ;;  %s800_s4 = smov (!%p299_p13), [#allocation3]  }
  0x32   : > { %615 = vmatprep.subr.bf16.mxu0 (!%p299_p13), %v614_v37  ;;  %646 = vmatprep.subr.bf16.mxu1 (!%p299_p13), %v614_v37  ;;  %v365_v46 = vld [vmem:[%s961_s8 + $0xa8] sm:$0xff] (!%p299_p13)  ;;  %v620_v47 = vpack.c.bf16 (!%p299_p13), %v347_v44, %v346_v43  ;;  %v348_v49 = vld [vmem:[%s961_s8 + $0x20] sm:$0xff] (!%p299_p13)  ;;  %v366_v51 = vld [vmem:[%s961_s8 + $0xb0] sm:$0xff] (!%p299_p13)  ;;  %p721_p0 = scmp.ne.s32.totalorder (!%p299_p13), %s1003_s25, %s720_s12  ;;  %s724_s5 = sshll.u32 (!%p299_p13), %s800_s4, 4  ;;  %s725_s5 = int_to_ptr.vmem [resolvable:$false] %s724_s5 }
  0x33   : > { %617 = vmatpush3.bf16.msra.mxu0 (!%p299_p13), %v616_v41  ;;  %654 = vmatpush3.bf16.msra.mxu1 (!%p299_p13), %v616_v41  ;;  %v622_v48 = vpack.c.bf16 (!%p299_p13), %v365_v46, %v364_v45  ;;  %v349_v50 = vld [vmem:[%s961_s8 + $0x28] sm:$0xff] (!%p299_p13)  ;;  %v367_v52 = vld [vmem:[%s961_s8 + $0xb8] sm:$0xff] (!%p299_p13)  ;;  %v350_v55 = vld [vmem:[%s961_s8 + $0x30] sm:$0xff] (!%p299_p13)  ;;  %s726_s6 = scalar_lea.vmem (!%p299_p13), %s725_s5, 512  ;;  %p727_p3 = scmp.lt.s32.totalorder (!%p299_p13), %s1003_s25, %s725_s5 }
  0x34   : > { %619 = vmatprep.subr.bf16.mxu0 %v618_v42  ;;  %647 = vmatprep.subr.bf16.mxu1 %v618_v42  ;;  %v624_v53 = vpack.c.bf16 %v349_v50, %v348_v49  ;;  %v626_v54 = vpack.c.bf16 %v367_v52, %v366_v51  ;;  %v351_v56 = vld [vmem:[%s961_s8 + $0x38] sm:$0xff]  ;;  %v368_v57 = vld [vmem:[%s961_s8 + $0xc0] sm:$0xff]  ;;  %v369_v58 = vld [vmem:[%s961_s8 + $0xc8] sm:$0xff]  ;;  %p722_p1 = pnand %p721_p0, %p858_p5  ;;  %p728_p4 = scmp.lt.s32.totalorder %s726_s6, %s720_s12 }
  0x35   : > { %v628_v59 = vpack.c.bf16 %v351_v56, %v350_v55  ;;  %v630_v60 = vpack.c.bf16 %v369_v58, %v368_v57  ;;  %v352_v61 = vld [vmem:[%s961_s8 + $0x40] sm:$0xff]  ;;  %v353_v62 = vld [vmem:[%s961_s8 + $0x48] sm:$0xff]  ;;  %v370_v63 = vld [vmem:[%s961_s8 + $0xd0] sm:$0xff] }
  0x36   : > { %v371_v0 = vld [vmem:[%s961_s8 + $0xd8] sm:$0xff]  ;;  %v632_v1 = vpack.c.bf16 %v353_v62, %v352_v61  ;;  %v354_v3 = vld [vmem:[%s961_s8 + $0x50] sm:$0xff]  ;;  %v372_v5 = vld [vmem:[%s961_s8 + $0xe0] sm:$0xff]  ;;  %p723_p2 = pneg %p722_p1  ;;  %p729_p6 = por %p728_p4, %p727_p3 }
  0x37   : > { %621 = vmatpush3.bf16.msra.mxu0 %v620_v47  ;;  %655 = vmatpush3.bf16.msra.mxu1 %v620_v47  ;;  %v634_v2 = vpack.c.bf16 %v371_v0, %v370_v63  ;;  %v355_v4 = vld [vmem:[%s961_s8 + $0x58] sm:$0xff]  ;;  %v373_v6 = vld [vmem:[%s961_s8 + $0xe8] sm:$0xff]  ;;  %v356_v9 = vld [vmem:[%s961_s8 + $0x60] sm:$0xff] }
  0x38   : > { %623 = vmatprep.subr.bf16.mxu0 %v622_v48  ;;  %648 = vmatprep.subr.bf16.mxu1 %v622_v48  ;;  %v636_v7 = vpack.c.bf16 %v355_v4, %v354_v3  ;;  %v638_v8 = vpack.c.bf16 %v373_v6, %v372_v5  ;;  %v357_v10 = vld [vmem:[%s961_s8 + $0x68] sm:$0xff]  ;;  %v374_v11 = vld [vmem:[%s961_s8 + $0xf0] sm:$0xff]  ;;  %v375_v12 = vld [vmem:[%s961_s8 + $0xf8] sm:$0xff]  ;;  %p730_p7 = pnand %p729_p6, %p723_p2 }
  0x39   : > { %v640_v13 = vpack.c.bf16 %v357_v10, %v356_v9  ;;  %v642_v14 = vpack.c.bf16 %v375_v12, %v374_v11  ;;  %v358_v15 = vld [vmem:[%s961_s8 + $0x70] sm:$0xff]  ;;  %v359_v16 = vld [vmem:[%s961_s8 + $0x78] sm:$0xff] }
  0x3a   : > { %v644_v17 = vpack.c.bf16 %v359_v16, %v358_v15 }
  0x3b   : > { %625 = vmatpush3.bf16.msra.mxu0 %v624_v53  ;;  %656 = vmatpush3.bf16.msra.mxu1 %v624_v53 }
  0x3c   : > { %627 = vmatprep.subr.bf16.mxu0 %v626_v54  ;;  %649 = vmatprep.subr.bf16.mxu1 %v626_v54 }
  0x3f   : > { %629 = vmatpush3.bf16.msra.mxu0 %v628_v59  ;;  %657 = vmatpush3.bf16.msra.mxu1 %v628_v59 }
  0x40   : > { %631 = vmatprep.subr.bf16.mxu0 %v630_v60  ;;  %650 = vmatprep.subr.bf16.mxu1 %v630_v60 }
  0x43   : > { %633 = vmatpush3.bf16.msra.mxu0 %v632_v1  ;;  %658 = vmatpush3.bf16.msra.mxu1 %v632_v1 }
  0x44   : > { %635 = vmatprep.subr.bf16.mxu0 %v634_v2  ;;  %651 = vmatprep.subr.bf16.mxu1 %v634_v2 }
  0x47   : > { %637 = vmatpush3.bf16.msra.mxu0 %v636_v7  ;;  %659 = vmatpush3.bf16.msra.mxu1 %v636_v7 }
  0x48   : > { %639 = vmatprep.subr.bf16.mxu0 %v638_v8  ;;  %652 = vmatprep.subr.bf16.mxu1 %v638_v8 }
  0x4b   : > { %641 = vmatpush3.bf16.msra.mxu0 %v640_v13  ;;  %660 = vmatpush3.bf16.msra.mxu1 %v640_v13 }
  0x4c   : > { %643 = vmatprep.subr.bf16.mxu0 %v642_v14  ;;  %653 = vmatprep.subr.bf16.mxu1 %v642_v14 }
  0x4f   : > { %645 = vmatpush3.bf16.msra.mxu0 %v644_v17  ;;  %661 = vmatpush3.bf16.msra.mxu1 %v644_v17 }
  0x52   : > { %441 = vmatmul.mubr.f32.vlgmr.msra.gmra.mrb[0].mxu0 %v340_v18  ;;  %446 = vmatmul.mubr.f32.vlgmr.msra.gmra.mrb[0].mxu1 %v342_v19 }
 0x125   : > { %v608_v20 = vpop.f32.mrb[0].mxu0  ;;  %v611_v21 = vpop.f32.mrb[0].mxu1 }
 0x126   : > { %v609_v22 = vpop.f32.mrb[1].mxu0  ;;  %v612_v23 = vpop.f32.mrb[1].mxu1 }
 0x127   : > { %v610_v24 = vadd.f32 %v609_v22, %v608_v20  ;;  %v613_v25 = vadd.f32 %v612_v23, %v611_v21 }
 0x129   : > { %451 = vst [vmem:[%s331_s24] sm:$0xff] %v610_v24  ;;  %452 = vst [vmem:[%s331_s24 + $0x8] sm:$0xff] %v613_v25 }
 0x12a   : > { %733 = shalt.err (!%p730_p7)
}
 0x12b   : > { %s734_s7 = scalar_lea.hbm %s1008_s29, 256  ;;  %s738_s16 = scalar_lea.hbm %s1059_s2, 512 }
 0x12c   : > { %p735_p8 = scmp.ne.s32.totalorder %s1008_s29, %s734_s7  ;;  %p739_p13 = scmp.lt.u32.totalorder %s1008_s29, %s1059_s2 }
 0x12d   : > { %p740_p0 = scmp.lt.u32.totalorder %s738_s16, %s734_s7  ;;  %p742_p2 = scmp.lt.u32.totalorder %s734_s7, %s1008_s29 }
 0x12e   : > { %p736_p11 = pnand %p735_p8, %p858_p5 }
 0x12f   : > { %p741_p1 = por %p740_p0, %p739_p13 }
 0x130   : > { %p737_p12 = pneg %p736_p11 }
 0x131   : > { %p743_p3 = por %p742_p2, %p741_p1 }
 0x133   : > { %p744_p4 = pnand %p743_p3, %p737_p12 }
 0x135   : > { %747 = shalt.err (!%p744_p4)
}
 0x136   : > { %s801_s23 = smov 128   ;;  %s802_s24 = smov 256  }
 0x137   : > { %s803_s26 = smov 8  }
 0x138   : > { %662 = dma.vmem_to_hbm [thread:$0]  (%p858_p5), %s1003_s25, 256, %s1008_s29, %s454_s3, %s801_s23, %s802_s24, %s803_s26  }
 0x139 PF: > { %s484_s27 = sand.u32 1, %s778_s9   ;;  %p665_p6 = pnand %p566_p10, %p869_p9 }
 0x13a   : > { %s485_s28 = scalar_lea.sflag [#allocation4], %s484_s27 }
 0x13b   : > { %773 = dma.done.wait (!%p665_p6), %s485_s28, 256  }
 0x13c   : > { %775 = vsyncadd (!%p665_p6), %s485_s28, 4294967040  ;;  %s15_s14 = sadd.s32 1, %s798_s14   ;;  %s1062_s9 = smov %s782_s10 }
 0x13d   : > { %p12_p7 = scmp.ge.s32.totalorder %s15_s14, 4   ;;  %s1063_s10 = smov %s786_s11 }
 0x13e   : > { %s1064_s11 = smov %s867_s21  ;;  %s1065_s12 = smov %s794_s13 }
 0x13f   : > { %s1066_s13 = smov %s1068_s17  ;;  %14 = sbr.rel (!%p12_p7) target bundleno = 4 (0x4), region = 109 }
 0x146   :  { %490 = vsyncpa [#allocation4], 1 }
 0x147   :  { %492 = vsyncpa [#allocation4 + $0x1], 1 }

</bundles_post_ra>
